<compile_context>
chip_gen: v7x
topology: tpu7x:2x2x1
jax: 0.10.0
libtpu: 0.0.40
codegen_flags: <defaults>
</compile_context>

<pallas_src>
import functools

import numpy as np

import jax
import jax.numpy as jnp
from jax import lax
from jax.experimental import pallas as pl
from jax.experimental.pallas import tpu as pltpu


IN_DIM = 32
MEM_DIM = 32
MAX_CHILDREN = 8          # max children per node supported by the child table


def _round_up(x, m):
    return ((x + m - 1) // m) * m


# ----------------------------------------------------------------------------
# Pallas kernel: one grid step == one tree level (all nodes in that level).
#
#   inputs (VMEM):
#     nid_sub_ref  : (1, LW, 1)      int32  node id per level slot (-1 = pad)
#     nid_lane_ref : (1, 1, LW)      int32  same ids, lane layout (for scatter)
#     cid_sub_ref  : (1, MC*LW, 1)   int32  child id per (child-pos, slot),
#                                           row = k*LW + s, -1 = missing child
#     x_ref    : (SR, D)      f32  node inputs, padded rows are zero
#     wtop_ref : (D, 4M)      f32  [W_ioux | W_fx]
#     wbot_ref : (M, 4M)      f32  [W_iouh | 0]
#     bfu_ref  : (1, 4M)      f32  [b_ioux + b_iouh | b_fx]
#     wfh_ref  : (M, M)       f32
#     bfh_ref  : (1, M)       f32
#     ssum_ref : (LW, MC*LW)  f32  summation matrix, S[s, k*LW + s] = 1
#   output (VMEM, resident accumulator across the whole grid):
#     state_ref : (SR, 2M)    f32  row r = [c | h] of node r
# ----------------------------------------------------------------------------
def _tree_level_kernel(nid_sub_ref, nid_lane_ref, cid_sub_ref,
                       x_ref, wtop_ref, wbot_ref, bfu_ref, wfh_ref, bfh_ref,
                       ssum_ref,
                       state_ref,
                       *, level_width, state_rows):
    M = MEM_DIM
    MC = MAX_CHILDREN
    LW = level_width
    SR = state_rows

    l = pl.program_id(0)

    # Zero the resident state once (rows never scattered to stay exactly 0,
    # which is the PyTorch zeros(1, mem_dim) leaf-child convention).
    @pl.when(l == 0)
    def _():
        state_ref[...] = jnp.zeros_like(state_ref)

    # ---- Phase 1: one-hot MXU gathers (no per-row copies, no scalar loads) -
    nid_col = nid_sub_ref[0]                                  # (LW, 1)
    cid_col = cid_sub_ref[0]                                  # (MC*LW, 1)

    g_nodes = (lax.broadcasted_iota(jnp.int32, (LW, SR), 1)
               == nid_col).astype(jnp.float32)                # (LW, SR)
    g_child = (lax.broadcasted_iota(jnp.int32, (MC * LW, SR), 1)
               == cid_col).astype(jnp.float32)                # (MC*LW, SR)

    xb = jnp.dot(g_nodes, x_ref[...],
                 preferred_element_type=jnp.float32)          # (LW, D)
    chc = jnp.dot(g_child, state_ref[...],
                  preferred_element_type=jnp.float32)         # (MC*LW, 2M)
    child_c = chc[:, 0:M]                                     # (MC*LW, M)
    child_h = chc[:, M:2 * M]                                 # (MC*LW, M)

    s_sum = ssum_ref[...]                                     # (LW, MC*LW)
    h_sum = jnp.dot(s_sum, child_h,
                    preferred_element_type=jnp.float32)       # (LW, M)

    # ---- Phase 2: batched gate math (split matmuls, no lane concatenate) ---
    res = (jnp.dot(xb, wtop_ref[...], preferred_element_type=jnp.float32)
           + jnp.dot(h_sum, wbot_ref[...], preferred_element_type=jnp.float32)
           + bfu_ref[...])                                    # (LW, 4M)

    io = jax.nn.sigmoid(res[:, 0:2 * M])                      # i and o fused
    i = io[:, 0:M]
    o = io[:, M:2 * M]
    u = jnp.tanh(res[:, 2 * M:3 * M])
    fx = res[:, 3 * M:4 * M]                                  # x@W_fx + b_fx

    fh = jnp.dot(child_h, wfh_ref[...],
                 preferred_element_type=jnp.float32)          # (MC*LW, M)
    fx_all = jnp.concatenate([fx] * MC, axis=0)               # (MC*LW, M)
    f = jax.nn.sigmoid(fh + fx_all + bfh_ref[...])            # one fused pass
    fc = f * child_c                                          # missing child c == 0
    fc_sum = jnp.dot(s_sum, fc,
                     preferred_element_type=jnp.float32)      # (LW, M)

    c_new = i * u + fc_sum                                    # (LW, M)
    h_new = o * jnp.tanh(c_new)                               # (LW, M)
    out_rows = jnp.concatenate([c_new, h_new], axis=1)        # (LW, 2M)

    # ---- Phase 3: one-hot MXU scatter-add into the resident state ----------
    # Each real node is written exactly once over the whole grid and state
    # starts at zero, so add == write.  Padded slots (id = -1) have an all-
    # zero one-hot column and contribute nothing.
    nid_row = nid_lane_ref[0]                                 # (1, LW)
    gt = (lax.broadcasted_iota(jnp.int32, (SR, LW), 0)
          == nid_row).astype(jnp.float32)                     # (SR, LW)
    state_ref[...] = state_ref[...] + jnp.dot(
        gt, out_rows, preferred_element_type=jnp.float32)


# ----------------------------------------------------------------------------
# pallas_call builder (cached per bucketed tree geometry).
# ----------------------------------------------------------------------------
@functools.lru_cache(maxsize=None)
def _build_runner(num_levels, level_width, state_rows):
    M, D, MC, LW, SR = MEM_DIM, IN_DIM, MAX_CHILDREN, level_width, state_rows

    kernel = functools.partial(_tree_level_kernel,
                               level_width=LW, state_rows=SR)

    in_specs = [
        pl.BlockSpec((1, LW, 1), lambda l: (l, 0, 0)),        # node ids (sublane)
        pl.BlockSpec((1, 1, LW), lambda l: (l, 0, 0)),        # node ids (lane)
        pl.BlockSpec((1, MC * LW, 1), lambda l: (l, 0, 0)),   # child ids
        pl.BlockSpec((SR, D), lambda l: (0, 0)),              # x (resident)
        pl.BlockSpec((D, 4 * M), lambda l: (0, 0)),           # W_top
        pl.BlockSpec((M, 4 * M), lambda l: (0, 0)),           # W_bot
        pl.BlockSpec((1, 4 * M), lambda l: (0, 0)),           # b fused
        pl.BlockSpec((M, M), lambda l: (0, 0)),               # W_fh
        pl.BlockSpec((1, M), lambda l: (0, 0)),               # b_fh
        pl.BlockSpec((LW, MC * LW), lambda l: (0, 0)),        # summation matrix
    ]
    out_spec = pl.BlockSpec((SR, 2 * M), lambda l: (0, 0))    # resident state

    # Explicit VMEM budget (review item 6): blocks are small but the pipeline
    # may double-buffer them; budget ~3x the resident footprint plus slack,
    # clipped to stay under the v7x 64 MiB physical VMEM.
    block_bytes = (
        4 * (LW + LW + MC * LW)                       # id tables
        + 4 * SR * D                                  # x
        + 4 * ((D + M) * 4 * M + 4 * M + M * M + M)   # weights + biases
        + 4 * LW * MC * LW                            # summation matrix
        + 4 * SR * 2 * M                              # state
    )
    vmem_limit = int(min(64 * 2**20, max(32 * 2**20, 3 * block_bytes + (4 << 20))))

    flops_per_level = (
        2 * LW * SR * D + 2 * (MC * LW) * SR * (2 * M)        # gathers
        + 2 * LW * (MC * LW) * M                              # h_sum
        + 2 * LW * (D + M) * (4 * M)                          # iou/fx
        + 2 * (MC * LW) * M * M                               # fh
        + 2 * LW * (MC * LW) * M                              # fc_sum
        + 2 * SR * LW * (2 * M))                              # scatter
    trans_per_level = LW * (2 * M + M + M) + (MC * LW) * M
    bytes_accessed = int(
        num_levels * (4 * SR * D + 8 * SR * 2 * M + 4 * (MC + 2) * LW)
        + 4 * ((D + M) * 4 * M + 4 * M + M * M + M + LW * MC * LW)
        + 4 * SR * 2 * M)

    call = pl.pallas_call(
        kernel,
        out_shape=jax.ShapeDtypeStruct((SR, 2 * M), jnp.float32),
        grid=(num_levels,),
        in_specs=in_specs,
        out_specs=out_spec,
        compiler_params=pltpu.CompilerParams(
            dimension_semantics=("arbitrary",),   # levels are sequential
            vmem_limit_bytes=vmem_limit),
        cost_estimate=pl.CostEstimate(
            flops=int(num_levels * flops_per_level),
            transcendentals=int(num_levels * trans_per_level),
            bytes_accessed=bytes_accessed),
    )

    @jax.jit
    def run(nid_sub, nid_lane, cid_sub, x_pad,
            w_top, w_bot, b_fused, w_fh, b_fh, s_sum):
        return call(nid_sub, nid_lane, cid_sub, x_pad,
                    w_top, w_bot, b_fused, w_fh, b_fh, s_sum)

    return run


# ----------------------------------------------------------------------------
# Host-side tree preprocessing.
# TODO(synk): the recursive pointer-chasing tree walk (Python objects) has no
# Pallas equivalent; it is flattened here into per-level id tables consumed
# by the single whole-tree kernel.
# ----------------------------------------------------------------------------
class Tree:
    def __init__(self, node_id, children=()):
        self.id = node_id
        self.children = list(children)
        self.num_children = len(self.children)
        self.state = None


def _node_height(t, heights):
    if t.num_children == 0:
        h = 0
    else:
        h = 1 + max(_node_height(c, heights) for c in t.children)
    heights[t.id] = h
    return h


def build_tree_tables(tree, num_nodes):
    heights = {}
    _node_height(tree, heights)
    depth = max(heights.values()) + 1

    levels = [[] for _ in range(depth)]

    def visit(t):
        if t.num_children > MAX_CHILDREN:
            raise ValueError(
                f"node {t.id} has {t.num_children} children > "
                f"MAX_CHILDREN={MAX_CHILDREN}")
        levels[heights[t.id]].append(t)
        for c in t.children:
            visit(c)

    visit(tree)

    # Bucketed static geometry (review item 9): distinct trees of similar
    # size reuse the same compiled kernel.  Padded levels / slots / rows are
    # benign: padded ids are -1, so their gather rows are zero and their
    # scatter columns are zero.
    num_levels = _round_up(depth, 4)
    lw = max(8, _round_up(max(len(lv) for lv in levels), 8))
    state_rows = max(64, _round_up(num_nodes, 64))

    node_ids = np.full((num_levels, lw, 1), -1, dtype=np.int32)
    child_ids = np.full((num_levels, MAX_CHILDREN * lw, 1), -1, dtype=np.int32)
    for h, lv in enumerate(levels):
        for s, t in enumerate(lv):
            node_ids[h, s, 0] = t.id
            for k, c in enumerate(t.children):
                child_ids[h, k * lw + s, 0] = c.id          # child-pos major
    node_ids_lane = np.ascontiguousarray(node_ids.reshape(num_levels, 1, lw))

    # Summation matrix: S[s, k*lw + s] = 1 — reduces over the child planes
    # on the MXU (h_sum and sum_k f_k*c_k).
    s_sum = np.zeros((lw, MAX_CHILDREN * lw), dtype=np.float32)
    for k in range(MAX_CHILDREN):
        for s in range(lw):
            s_sum[s, k * lw + s] = 1.0

    return node_ids, node_ids_lane, child_ids, s_sum, num_levels, lw, state_rows


def _assign_states(tree, state_np):
    # Mirror the PyTorch module's side effect of setting node.state, using a
    # single device->host copy.
    for c in tree.children:
        _assign_states(c, state_np)
    row = state_np[tree.id]
    tree.state = (row[:MEM_DIM].reshape(1, MEM_DIM),
                  row[MEM_DIM:].reshape(1, MEM_DIM))


def tree_lstm_forward(tree, inputs, packed_params):
    """Whole-tree ChildSum-TreeLSTM forward in a single pallas_call."""
    w_top, w_bot, b_fused, w_fh, b_fh = packed_params
    n = inputs.shape[0]
    (node_ids, node_ids_lane, child_ids, s_sum,
     num_levels, lw, state_rows) = build_tree_tables(tree, n)

    x_pad = jnp.zeros((state_rows, IN_DIM), jnp.float32)
    x_pad = x_pad.at[:n].set(inputs.astype(jnp.float32))

    run = _build_runner(num_levels, lw, state_rows)
    state = run(jnp.asarray(node_ids), jnp.asarray(node_ids_lane),
                jnp.asarray(child_ids), x_pad,
                w_top, w_bot, b_fused, w_fh, b_fh, jnp.asarray(s_sum))

    _assign_states(tree, np.asarray(state))
    c_root = state[tree.id:tree.id + 1, :MEM_DIM]
    h_root = state[tree.id:tree.id + 1, MEM_DIM:]
    return c_root, h_root


# ----------------------------------------------------------------------------
# Parameters (nn.Linear-style init, pre-transposed so y = x @ W + b) and the
# host-side packing into the fused f32 layout used by the kernel.  Everything
# stays f32 (review correctness note: keep f32 operands for parity; the MXU
# cost difference is negligible at these sizes) — no in-kernel casts remain.
# ----------------------------------------------------------------------------
def init_params(key):
    ks = jax.random.split(key, 8)

    def linear(kw, kb, fan_in, fan_out):
        bound = 1.0 / np.sqrt(float(fan_in))
        w = jax.random.uniform(kw, (fan_in, fan_out), jnp.float32, -bound, bound)
        b = jax.random.uniform(kb, (1, fan_out), jnp.float32, -bound, bound)
        return w, b

    w_ioux, b_ioux = linear(ks[0], ks[1], IN_DIM, 3 * MEM_DIM)
    w_iouh, b_iouh = linear(ks[2], ks[3], MEM_DIM, 3 * MEM_DIM)
    w_fx, b_fx = linear(ks[4], ks[5], IN_DIM, MEM_DIM)
    w_fh, b_fh = linear(ks[6], ks[7], MEM_DIM, MEM_DIM)
    return (w_ioux, b_ioux, w_iouh, b_iouh, w_fx, b_fx, w_fh, b_fh)


def pack_params(params):
    (w_ioux, b_ioux, w_iouh, b_iouh, w_fx, b_fx, w_fh, b_fh) = params
    # cols = [i|o|u (3M) | fx (M)]
    w_top = jnp.concatenate([w_ioux, w_fx], axis=1)                     # (D, 4M)
    w_bot = jnp.concatenate(
        [w_iouh, jnp.zeros((MEM_DIM, MEM_DIM), jnp.float32)], axis=1)   # (M, 4M)
    b_fused = jnp.concatenate([b_ioux + b_iouh, b_fx], axis=1)          # (1, 4M)
    return w_top, w_bot, b_fused, w_fh, b_fh


# ----------------------------------------------------------------------------
# Pure-JAX reference (f32), for an in-script sanity check.
# ----------------------------------------------------------------------------
def _ref_node_forward(x, child_c, child_h, params):
    (w_ioux, b_ioux, w_iouh, b_iouh, w_fx, b_fx, w_fh, b_fh) = params
    x = x.reshape(1, IN_DIM)
    h_sum = jnp.sum(child_h, axis=0, keepdims=True)
    iou = x @ w_ioux + b_ioux + h_sum @ w_iouh + b_iouh
    i = jax.nn.sigmoid(iou[:, :MEM_DIM])
    o = jax.nn.sigmoid(iou[:, MEM_DIM:2 * MEM_DIM])
    u = jnp.tanh(iou[:, 2 * MEM_DIM:])
    f = jax.nn.sigmoid(child_h @ w_fh + b_fh + (x @ w_fx + b_fx))
    c = i * u + jnp.sum(f * child_c, axis=0, keepdims=True)
    h = o * jnp.tanh(c)
    return c, h


def _ref_tree(tree, inputs, params):
    states = {}

    def rec(t):
        for c in t.children:
            rec(c)
        if t.num_children == 0:
            cc = jnp.zeros((1, MEM_DIM), jnp.float32)
            hh = jnp.zeros((1, MEM_DIM), jnp.float32)
        else:
            cc = jnp.concatenate([states[c.id][0] for c in t.children], axis=0)
            hh = jnp.concatenate([states[c.id][1] for c in t.children], axis=0)
        states[t.id] = _ref_node_forward(inputs[t.id], cc, hh, params)

    rec(tree)
    return states[tree.id]


if __name__ == "__main__":
    key = jax.random.PRNGKey(0)
    k_params, k_inputs = jax.random.split(key)

    params = init_params(k_params)
    packed = pack_params(params)

    # Small deterministic tree:
    #   root(0) -> [ n1(1) -> [leaf(3), leaf(4)],  n2(2) -> [leaf(5)] ]
    tree = Tree(0, [
        Tree(1, [Tree(3), Tree(4)]),
        Tree(2, [Tree(5)]),
    ])
    num_nodes = 6
    inputs = jax.random.normal(k_inputs, (num_nodes, IN_DIM), jnp.float32)

    c, h = tree_lstm_forward(tree, inputs, packed)
    jax.block_until_ready((c, h))
    assert c.shape == (1, MEM_DIM) and h.shape == (1, MEM_DIM)

    # Sanity check against the f32 pure-JAX reference.  Tolerance stays
    # conservative w.r.t. the MXU's f32 pass behaviour inside the kernel.
    c_ref, h_ref = _ref_tree(tree, inputs, params)
    np.testing.assert_allclose(np.asarray(c), np.asarray(c_ref), rtol=5e-2, atol=5e-2)
    np.testing.assert_allclose(np.asarray(h), np.asarray(h_ref), rtol=5e-2, atol=5e-2)

    print("KERNEL_OK")
</pallas_src>

<mosaic_0001>
module attributes {stable_mosaic.version = 11 : i64} {
  func.func @_tree_level_kernel(%arg0: i32, %arg1: memref<1x8x1xi32, #tpu.memory_space<vmem>>, %arg2: memref<1x1x8xi32, #tpu.memory_space<vmem>>, %arg3: memref<1x64x1xi32, #tpu.memory_space<vmem>>, %arg4: memref<64x32xf32, #tpu.memory_space<vmem>>, %arg5: memref<32x128xf32, #tpu.memory_space<vmem>>, %arg6: memref<32x128xf32, #tpu.memory_space<vmem>>, %arg7: memref<1x128xf32, #tpu.memory_space<vmem>>, %arg8: memref<32x32xf32, #tpu.memory_space<vmem>>, %arg9: memref<1x32xf32, #tpu.memory_space<vmem>>, %arg10: memref<8x64xf32, #tpu.memory_space<vmem>>, %arg11: memref<64x64xf32, #tpu.memory_space<vmem>>) attributes {dimension_semantics = [#tpu.dimension_semantics<arbitrary>], iteration_bounds = array<i64: 4>, scalar_prefetch = 0 : i64, scratch_operands = 0 : i64, tpu.core_type = #tpu.core_type<tc>, window_params = [{transform_indices = @transform_0, window_bounds = array<i64: 1, 8, 1>}, {transform_indices = @transform_1, window_bounds = array<i64: 1, 1, 8>}, {transform_indices = @transform_2, window_bounds = array<i64: 1, 64, 1>}, {pipeline_mode = #tpu.pipeline_mode<synchronous>, transform_indices = @transform_3, window_bounds = array<i64: 64, 32>}, {pipeline_mode = #tpu.pipeline_mode<synchronous>, transform_indices = @transform_4, window_bounds = array<i64: 32, 128>}, {pipeline_mode = #tpu.pipeline_mode<synchronous>, transform_indices = @transform_5, window_bounds = array<i64: 32, 128>}, {pipeline_mode = #tpu.pipeline_mode<synchronous>, transform_indices = @transform_6, window_bounds = array<i64: 1, 128>}, {pipeline_mode = #tpu.pipeline_mode<synchronous>, transform_indices = @transform_7, window_bounds = array<i64: 32, 32>}, {pipeline_mode = #tpu.pipeline_mode<synchronous>, transform_indices = @transform_8, window_bounds = array<i64: 1, 32>}, {pipeline_mode = #tpu.pipeline_mode<synchronous>, transform_indices = @transform_9, window_bounds = array<i64: 8, 64>}, {pipeline_mode = #tpu.pipeline_mode<synchronous>, transform_indices = @transform_10, window_bounds = array<i64: 64, 64>}]} {
    %c0_i32 = arith.constant 0 : i32
    %0 = arith.cmpi eq, %arg0, %c0_i32 : i32
    %1 = arith.extui %0 : i1 to i32
    %c0_i32_0 = arith.constant 0 : i32
    %2 = arith.cmpi ne, %1, %c0_i32_0 : i32
    scf.if %2 {
      %cst_38 = arith.constant 0.000000e+00 : f32
      %74 = vector.broadcast %cst_38 : f32 to vector<64x64xf32>
      %c0_39 = arith.constant 0 : index
      %c0_40 = arith.constant 0 : index
      %75 = vector.load %arg11[%c0_39, %c0_40] : memref<64x64xf32, #tpu.memory_space<vmem>>, vector<64x64xf32>
      tpu.vector_store %arg11[%c0_39, %c0_40], %74 {strides = array<i32>} : memref<64x64xf32, #tpu.memory_space<vmem>>, vector<64x64xf32>,
    } else {
    }
    %c0 = arith.constant 0 : index
    %c0_1 = arith.constant 0 : index
    %c0_2 = arith.constant 0 : index
    %3 = vector.load %arg1[%c0, %c0_1, %c0_2] : memref<1x8x1xi32, #tpu.memory_space<vmem>>, vector<1x8x1xi32>
    %4 = vector.shape_cast %3 : vector<1x8x1xi32> to vector<8x1xi32>
    %c0_3 = arith.constant 0 : index
    %c0_4 = arith.constant 0 : index
    %c0_5 = arith.constant 0 : index
    %5 = vector.load %arg3[%c0_3, %c0_4, %c0_5] : memref<1x64x1xi32, #tpu.memory_space<vmem>>, vector<1x64x1xi32>
    %6 = vector.shape_cast %5 : vector<1x64x1xi32> to vector<64x1xi32>
    %7 = tpu.iota {dimensions = array<i32: 1>} : vector<8x64xi32>
    %8 = vector.broadcast %4 : vector<8x1xi32> to vector<8x64xi32>
    %9 = arith.cmpi eq, %7, %8 : vector<8x64xi32>
    %10 = arith.extui %9 : vector<8x64xi1> to vector<8x64xi32>
    %11 = arith.sitofp %10 : vector<8x64xi32> to vector<8x64xf32>
    %12 = tpu.iota {dimensions = array<i32: 1>} : vector<64x64xi32>
    %13 = vector.broadcast %6 : vector<64x1xi32> to vector<64x64xi32>
    %14 = arith.cmpi eq, %12, %13 : vector<64x64xi32>
    %15 = arith.extui %14 : vector<64x64xi1> to vector<64x64xi32>
    %16 = arith.sitofp %15 : vector<64x64xi32> to vector<64x64xf32>
    %c0_6 = arith.constant 0 : index
    %c0_7 = arith.constant 0 : index
    %17 = vector.load %arg4[%c0_6, %c0_7] : memref<64x32xf32, #tpu.memory_space<vmem>>, vector<64x32xf32>
    %cst = arith.constant dense<0.000000e+00> : vector<8x32xf32>
    %18 = tpu.matmul %11, %17, %cst {dimension_numbers = #tpu.dot_dimension_numbers<[1], [0], [0], [1], [0, 0, 1, 1], [], []>} : vector<8x64xf32>, vector<64x32xf32>, vector<8x32xf32> -> vector<8x32xf32>
    %c0_8 = arith.constant 0 : index
    %c0_9 = arith.constant 0 : index
    %19 = vector.load %arg11[%c0_8, %c0_9] : memref<64x64xf32, #tpu.memory_space<vmem>>, vector<64x64xf32>
    %cst_10 = arith.constant dense<0.000000e+00> : vector<64x64xf32>
    %20 = tpu.matmul %16, %19, %cst_10 {dimension_numbers = #tpu.dot_dimension_numbers<[1], [0], [0], [1], [0, 0, 1, 1], [], []>} : vector<64x64xf32>, vector<64x64xf32>, vector<64x64xf32> -> vector<64x64xf32>
    %21 = vector.extract_strided_slice %20 {offsets = [0, 0], sizes = [64, 32], strides = [1, 1]} : vector<64x64xf32> to vector<64x32xf32>
    %22 = vector.extract_strided_slice %20 {offsets = [0, 32], sizes = [64, 32], strides = [1, 1]} : vector<64x64xf32> to vector<64x32xf32>
    %c0_11 = arith.constant 0 : index
    %c0_12 = arith.constant 0 : index
    %23 = vector.load %arg10[%c0_11, %c0_12] : memref<8x64xf32, #tpu.memory_space<vmem>>, vector<8x64xf32>
    %cst_13 = arith.constant dense<0.000000e+00> : vector<8x32xf32>
    %24 = tpu.matmul %23, %22, %cst_13 {dimension_numbers = #tpu.dot_dimension_numbers<[1], [0], [0], [1], [0, 0, 1, 1], [], []>} : vector<8x64xf32>, vector<64x32xf32>, vector<8x32xf32> -> vector<8x32xf32>
    %c0_14 = arith.constant 0 : index
    %c0_15 = arith.constant 0 : index
    %25 = vector.load %arg5[%c0_14, %c0_15] : memref<32x128xf32, #tpu.memory_space<vmem>>, vector<32x128xf32>
    %cst_16 = arith.constant dense<0.000000e+00> : vector<8x128xf32>
    %26 = tpu.matmul %18, %25, %cst_16 {dimension_numbers = #tpu.dot_dimension_numbers<[1], [0], [0], [1], [0, 0, 1, 1], [], []>} : vector<8x32xf32>, vector<32x128xf32>, vector<8x128xf32> -> vector<8x128xf32>
    %c0_17 = arith.constant 0 : index
    %c0_18 = arith.constant 0 : index
    %27 = vector.load %arg6[%c0_17, %c0_18] : memref<32x128xf32, #tpu.memory_space<vmem>>, vector<32x128xf32>
    %cst_19 = arith.constant dense<0.000000e+00> : vector<8x128xf32>
    %28 = tpu.matmul %24, %27, %cst_19 {dimension_numbers = #tpu.dot_dimension_numbers<[1], [0], [0], [1], [0, 0, 1, 1], [], []>} : vector<8x32xf32>, vector<32x128xf32>, vector<8x128xf32> -> vector<8x128xf32>
    %29 = arith.addf %26, %28 : vector<8x128xf32>
    %c0_20 = arith.constant 0 : index
    %c0_21 = arith.constant 0 : index
    %30 = vector.load %arg7[%c0_20, %c0_21] : memref<1x128xf32, #tpu.memory_space<vmem>>, vector<1x128xf32>
    %31 = vector.broadcast %30 : vector<1x128xf32> to vector<8x128xf32>
    %32 = arith.addf %29, %31 : vector<8x128xf32>
    %33 = vector.extract_strided_slice %32 {offsets = [0, 0], sizes = [8, 64], strides = [1, 1]} : vector<8x128xf32> to vector<8x64xf32>
    %34 = arith.negf %33 : vector<8x64xf32>
    %35 = math.exp %34 : vector<8x64xf32>
    %cst_22 = arith.constant 1.000000e+00 : f32
    %36 = vector.broadcast %cst_22 : f32 to vector<8x64xf32>
    %37 = arith.addf %36, %35 : vector<8x64xf32>
    %38 = arith.divf %36, %37 : vector<8x64xf32>
    %39 = vector.extract_strided_slice %38 {offsets = [0, 0], sizes = [8, 32], strides = [1, 1]} : vector<8x64xf32> to vector<8x32xf32>
    %40 = vector.extract_strided_slice %38 {offsets = [0, 32], sizes = [8, 32], strides = [1, 1]} : vector<8x64xf32> to vector<8x32xf32>
    %41 = vector.extract_strided_slice %32 {offsets = [0, 64], sizes = [8, 32], strides = [1, 1]} : vector<8x128xf32> to vector<8x32xf32>
    %42 = math.tanh %41 : vector<8x32xf32>
    %43 = vector.extract_strided_slice %32 {offsets = [0, 96], sizes = [8, 32], strides = [1, 1]} : vector<8x128xf32> to vector<8x32xf32>
    %c0_23 = arith.constant 0 : index
    %c0_24 = arith.constant 0 : index
    %44 = vector.load %arg8[%c0_23, %c0_24] : memref<32x32xf32, #tpu.memory_space<vmem>>, vector<32x32xf32>
    %cst_25 = arith.constant dense<0.000000e+00> : vector<64x32xf32>
    %45 = tpu.matmul %22, %44, %cst_25 {dimension_numbers = #tpu.dot_dimension_numbers<[1], [0], [0], [1], [0, 0, 1, 1], [], []>} : vector<64x32xf32>, vector<32x32xf32>, vector<64x32xf32> -> vector<64x32xf32>
    %46 = tpu.concatenate %43, %43, %43, %43, %43, %43, %43, %43 in 0 : vector<8x32xf32>, vector<8x32xf32>, vector<8x32xf32>, vector<8x32xf32>, vector<8x32xf32>, vector<8x32xf32>, vector<8x32xf32>, vector<8x32xf32> -> vector<64x32xf32>
    %47 = arith.addf %45, %46 : vector<64x32xf32>
    %c0_26 = arith.constant 0 : index
    %c0_27 = arith.constant 0 : index
    %48 = vector.load %arg9[%c0_26, %c0_27] : memref<1x32xf32, #tpu.memory_space<vmem>>, vector<1x32xf32>
    %49 = vector.broadcast %48 : vector<1x32xf32> to vector<64x32xf32>
    %50 = arith.addf %47, %49 : vector<64x32xf32>
    %51 = arith.negf %50 : vector<64x32xf32>
    %52 = math.exp %51 : vector<64x32xf32>
    %cst_28 = arith.constant 1.000000e+00 : f32
    %53 = vector.broadcast %cst_28 : f32 to vector<64x32xf32>
    %54 = arith.addf %53, %52 : vector<64x32xf32>
    %55 = arith.divf %53, %54 : vector<64x32xf32>
    %56 = arith.mulf %55, %21 : vector<64x32xf32>
    %cst_29 = arith.constant dense<0.000000e+00> : vector<8x32xf32>
    %57 = tpu.matmul %23, %56, %cst_29 {dimension_numbers = #tpu.dot_dimension_numbers<[1], [0], [0], [1], [0, 0, 1, 1], [], []>} : vector<8x64xf32>, vector<64x32xf32>, vector<8x32xf32> -> vector<8x32xf32>
    %58 = arith.mulf %39, %42 : vector<8x32xf32>
    %59 = arith.addf %58, %57 : vector<8x32xf32>
    %60 = math.tanh %59 : vector<8x32xf32>
    %61 = arith.mulf %40, %60 : vector<8x32xf32>
    %62 = tpu.concatenate %59, %61 in 1 : vector<8x32xf32>, vector<8x32xf32> -> vector<8x64xf32>
    %c0_30 = arith.constant 0 : index
    %c0_31 = arith.constant 0 : index
    %c0_32 = arith.constant 0 : index
    %63 = vector.load %arg2[%c0_30, %c0_31, %c0_32] : memref<1x1x8xi32, #tpu.memory_space<vmem>>, vector<1x1x8xi32>
    %64 = vector.shape_cast %63 : vector<1x1x8xi32> to vector<1x8xi32>
    %65 = tpu.iota {dimensions = array<i32: 0>} : vector<64x8xi32>
    %66 = vector.broadcast %64 : vector<1x8xi32> to vector<64x8xi32>
    %67 = arith.cmpi eq, %65, %66 : vector<64x8xi32>
    %68 = arith.extui %67 : vector<64x8xi1> to vector<64x8xi32>
    %69 = arith.sitofp %68 : vector<64x8xi32> to vector<64x8xf32>
    %c0_33 = arith.constant 0 : index
    %c0_34 = arith.constant 0 : index
    %70 = vector.load %arg11[%c0_33, %c0_34] : memref<64x64xf32, #tpu.memory_space<vmem>>, vector<64x64xf32>
    %cst_35 = arith.constant dense<0.000000e+00> : vector<64x64xf32>
    %71 = tpu.matmul %69, %62, %cst_35 {dimension_numbers = #tpu.dot_dimension_numbers<[1], [0], [0], [1], [0, 0, 1, 1], [], []>} : vector<64x8xf32>, vector<8x64xf32>, vector<64x64xf32> -> vector<64x64xf32>
    %72 = arith.addf %70, %71 : vector<64x64xf32>
    %c0_36 = arith.constant 0 : index
    %c0_37 = arith.constant 0 : index
    %73 = vector.load %arg11[%c0_36, %c0_37] : memref<64x64xf32, #tpu.memory_space<vmem>>, vector<64x64xf32>
    tpu.vector_store %arg11[%c0_36, %c0_37], %72 {strides = array<i32>} : memref<64x64xf32, #tpu.memory_space<vmem>>, vector<64x64xf32>,
    return
  }
  func.func @transform_0(%arg0: i32) -> (i32, i32, i32) {
    %c0_i32 = arith.constant 0 : i32
    %c0_i32_0 = arith.constant 0 : i32
    %c0_i32_1 = arith.constant 0 : i32
    return %arg0, %c0_i32, %c0_i32_0 : i32, i32, i32
  }
  func.func @transform_1(%arg0: i32) -> (i32, i32, i32) {
    %c0_i32 = arith.constant 0 : i32
    %c0_i32_0 = arith.constant 0 : i32
    %c0_i32_1 = arith.constant 0 : i32
    return %arg0, %c0_i32, %c0_i32_0 : i32, i32, i32
  }
  func.func @transform_2(%arg0: i32) -> (i32, i32, i32) {
    %c0_i32 = arith.constant 0 : i32
    %c0_i32_0 = arith.constant 0 : i32
    %c0_i32_1 = arith.constant 0 : i32
    return %arg0, %c0_i32, %c0_i32_0 : i32, i32, i32
  }
  func.func @transform_3(%arg0: i32) -> (i32, i32) {
    %c0_i32 = arith.constant 0 : i32
    %c0_i32_0 = arith.constant 0 : i32
    %c0_i32_1 = arith.constant 0 : i32
    return %c0_i32, %c0_i32_0 : i32, i32
  }
  func.func @transform_4(%arg0: i32) -> (i32, i32) {
    %c0_i32 = arith.constant 0 : i32
    %c0_i32_0 = arith.constant 0 : i32
    %c0_i32_1 = arith.constant 0 : i32
    return %c0_i32, %c0_i32_0 : i32, i32
  }
  func.func @transform_5(%arg0: i32) -> (i32, i32) {
    %c0_i32 = arith.constant 0 : i32
    %c0_i32_0 = arith.constant 0 : i32
    %c0_i32_1 = arith.constant 0 : i32
    return %c0_i32, %c0_i32_0 : i32, i32
  }
  func.func @transform_6(%arg0: i32) -> (i32, i32) {
    %c0_i32 = arith.constant 0 : i32
    %c0_i32_0 = arith.constant 0 : i32
    %c0_i32_1 = arith.constant 0 : i32
    return %c0_i32, %c0_i32_0 : i32, i32
  }
  func.func @transform_7(%arg0: i32) -> (i32, i32) {
    %c0_i32 = arith.constant 0 : i32
    %c0_i32_0 = arith.constant 0 : i32
    %c0_i32_1 = arith.constant 0 : i32
    return %c0_i32, %c0_i32_0 : i32, i32
  }
  func.func @transform_8(%arg0: i32) -> (i32, i32) {
    %c0_i32 = arith.constant 0 : i32
    %c0_i32_0 = arith.constant 0 : i32
    %c0_i32_1 = arith.constant 0 : i32
    return %c0_i32, %c0_i32_0 : i32, i32
  }
  func.func @transform_9(%arg0: i32) -> (i32, i32) {
    %c0_i32 = arith.constant 0 : i32
    %c0_i32_0 = arith.constant 0 : i32
    %c0_i32_1 = arith.constant 0 : i32
    return %c0_i32, %c0_i32_0 : i32, i32
  }
  func.func @transform_10(%arg0: i32) -> (i32, i32) {
    %c0_i32 = arith.constant 0 : i32
    %c0_i32_0 = arith.constant 0 : i32
    %c0_i32_1 = arith.constant 0 : i32
    return %c0_i32, %c0_i32_0 : i32, i32
  }
}

</mosaic_0001>

<bundles_post_ra>
// kernel: run.1
= control target key start
LH: loop header
LB: loop body
LE: loop exit
PB: predicated region body
PF: predicated region fallthrough
CT: control target
= control target key end

     0   :  { %15 = vsyncpa [#allocation3], 0  ;;  %s2015_s13 = smov 0   ;;  %s2323_s0 = inlined_call_operand.vmem [shape: s32[4,8,1], index: 0, kind: input, shape index: {}]   ;;  %s2324_s1 = inlined_call_operand.vmem [shape: s32[4,1,8], index: 1, kind: input, shape index: {}]   ;;  %s2325_s2 = inlined_call_operand.vmem [shape: s32[4,64,1], index: 2, kind: input, shape index: {}]   ;;  %s2326_s3 = inlined_call_operand.vmem [shape: f32[64,32], index: 3, kind: input, shape index: {}]   ;;  %s2327_s4 = inlined_call_operand.vmem [shape: f32[32,128], index: 4, kind: input, shape index: {}]   ;;  %s2328_s5 = inlined_call_operand.vmem [shape: f32[32,128], index: 5, kind: input, shape index: {}]   ;;  %s2329_s6 = inlined_call_operand.vmem [shape: f32[1,128], index: 6, kind: input, shape index: {}]   ;;  %s2330_s7 = inlined_call_operand.vmem [shape: f32[32,32], index: 7, kind: input, shape index: {}]   ;;  %s2331_s8 = inlined_call_operand.vmem [shape: f32[1,32], index: 8, kind: input, shape index: {}]   ;;  %s2332_s9 = inlined_call_operand.vmem [shape: f32[8,64], index: 9, kind: input, shape index: {}]   ;;  %s2333_s10 = inlined_call_operand.hbm [shape: f32[64,64], index: 10, kind: output, shape index: {}]  }
   0x1 LB: > { %s2021_s14 = sadd.s32 4294967295, %s1947_s13   ;;  %p1489_p0 = scmp.ge.s32.totalorder %s1947_s13, 1  ;;  %s1947_s13 = sphi %s2015_s13, %s21_s13  }
   0x2   : > { %p325_p1 = scmp.lt.s32.totalorder %s1947_s13, 5 }
   0x4   : > { %p326_p2 = pnand %p1489_p0, %p325_p1 }
   0x5   : > { %p365_p3 = scmp.lt.s32.totalorder (!%p326_p2), %s2021_s14, 3  ;;  %p1493_p4 = scmp.ne.s32.totalorder (!%p326_p2), %s2021_s14, 0 }
   0x6   : > { %329 = sbr.rel (%p326_p2) target bundleno = 1691 (0x69b), region = 60 }
   0xd   : > { %s2027_s15 = scalar_select %p365_p3, %s2021_s14, 3 }
   0xe   : > { %380 = sbr.rel (%p1493_p4) target bundleno = 21 (0x15), region = 64  ;;  %vm381_vm0 = vcmask (!%p1493_p4), 523264   ;;  %v1949_v0 = vmov (!%p1493_p4), 0.0  }
   0xf   : > { %s1490_s16 = sshll.u32 %s2027_s15, 3  ;;  %s371_s19 = scalar_lea.vmem %s2324_s1, %s2027_s15  ;;  %382 = vst.msk [vmem:[#allocation2] sm:$0xff] (!%p1493_p4), %vm381_vm0, %v1949_v0  ;;  %383 = vst.msk [vmem:[#allocation2 + $0x8] sm:$0xff] (!%p1493_p4), %vm381_vm0, %v1949_v0 }
  0x10   : > { %s2037_s22 = scalar_lea.vmem %s2323_s0, %s1490_s16  ;;  %s1556_s23 = sshll.u32 %s2027_s15, 6  ;;  %384 = vst.msk [vmem:[#allocation2 + $0x10] sm:$0xff] (!%p1493_p4), %vm381_vm0, %v1949_v0  ;;  %385 = vst.msk [vmem:[#allocation2 + $0x18] sm:$0xff] (!%p1493_p4), %vm381_vm0, %v1949_v0 }
  0x11   : > { %s2043_s26 = scalar_lea.vmem %s2325_s2, %s1556_s23  ;;  %386 = vst.msk [vmem:[#allocation2 + $0x20] sm:$0xff] (!%p1493_p4), %vm381_vm0, %v1949_v0  ;;  %387 = vst.msk [vmem:[#allocation2 + $0x28] sm:$0xff] (!%p1493_p4), %vm381_vm0, %v1949_v0 }
  0x12   : > { %388 = vst.msk [vmem:[#allocation2 + $0x30] sm:$0xff] (!%p1493_p4), %vm381_vm0, %v1949_v0  ;;  %389 = vst.msk [vmem:[#allocation2 + $0x38] sm:$0xff] (!%p1493_p4), %vm381_vm0, %v1949_v0 }
  0x15 PF: > { %v393_v1 = vld [vmem:[%s2043_s26 + $0x10] sm:$0xff]  ;;  %v391_v2 = vld [vmem:[%s2043_s26] sm:$0xff]  ;;  %v1950_v3 = vmov 0   ;;  %v394_v4 = vld [vmem:[%s2043_s26 + $0x18] sm:$0xff]  ;;  %v1951_v11 = vmov 0.0|0.0   ;;  %vm1952_vm1 = vmmov 0   ;;  %v399_v37 = vlaneseq }
  0x16   : > { %1870 = vset.pattern.permute.xlu1 %v1950_v3  ;;  %1869 = vset.pattern.permute.xlu0 %v1950_v3  ;;  %v392_v5 = vld [vmem:[%s2043_s26 + $0x8] sm:$0xff]  ;;  %v2050_v6 = vld [vmem:[#allocation2] sm:$0xff]  ;;  %v457_v17 = vld [vmem:[%s2326_s3 + $0x10] sm:$0xff]  ;;  %v1953_v36 = vmov 0.0   ;;  %vm463_vm2 = vcmask 523264   ;;  %s1954_s18 = smov 96  }
  0x17   : > { %414 = vperm.xlu1 %1870, %v393_v1   ;;  %408 = vperm.xlu0 %1869, %v391_v2   ;;  %v2052_v7 = vld [vmem:[#allocation2 + $0x8] sm:$0xff]  ;;  %v2054_v8 = vld [vmem:[#allocation2 + $0x10] sm:$0xff]  ;;  %v2058_v10 = vld [vmem:[#allocation2 + $0x18] sm:$0xff]  ;;  %v400_v38 = vand.u32 127, %v399_v37  ;;  %vm788_vm12 = vcmask 261120   ;;  %s1955_s25 = smov 32  }
  0x18   : > { %v1784_v9 = vpack.c.bf16 %v2052_v7, %v2050_v6  ;;  %1772 = vmatprep.subr.bf16.mxu0 %v1951_v11  ;;  %v1788_v12 = vpack.c.bf16 %v2058_v10, %v2054_v8  ;;  %v2063_v13 = vld [vmem:[#allocation2 + $0x20] sm:$0xff]  ;;  %v2065_v14 = vld [vmem:[#allocation2 + $0x28] sm:$0xff]  ;;  %v458_v18 = vld [vmem:[%s2326_s3 + $0x18] sm:$0xff]  ;;  %1647 = vmatprep.mubr.msk.f32.mxu0 %vm1952_vm1, %v1953_v36  ;;  %s1956_s27 = smov 64   ;;  %vm1271_vm13 = vcmask 64512   ;;  %s1957_s15 = smov [#allocation2]  }
  0x19   : > { %v455_v15 = vld [vmem:[%s2326_s3] sm:$0xff]  ;;  %v456_v16 = vld [vmem:[%s2326_s3 + $0x8] sm:$0xff]  ;;  %v1792_v22 = vpack.c.bf16 %v2065_v14, %v2063_v13  ;;  %v2083_v23 = vld [vmem:[#allocation2 + $0x30] sm:$0xff]  ;;  %v1776_v24 = vpack.c.bf16 %v458_v18, %v457_v17  ;;  %p1848_p5 = scmp.eq.s32.totalorder %s2021_s14, 3 }
  0x1a   : > { %v396_v19 = vld [vmem:[%s2043_s26 + $0x28] sm:$0xff]  ;;  %v395_v20 = vld [vmem:[%s2043_s26 + $0x20] sm:$0xff]  ;;  %1785 = vmatprep.subr.bf16.mxu1 %v1784_v9  ;;  %v1773_v21 = vpack.c.bf16 %v456_v16, %v455_v15  ;;  %v2085_v25 = vld [vmem:[#allocation2 + $0x38] sm:$0xff] }
  0x1b   : > { %417 = vperm.xlu1 %1870, %v394_v4   ;;  %411 = vperm.xlu0 %1869, %v392_v5   ;;  %v459_v26 = vld [vmem:[%s2326_s3 + $0x20] sm:$0xff]  ;;  %v460_v27 = vld [vmem:[%s2326_s3 + $0x28] sm:$0xff]  ;;  %v398_v28 = vld [vmem:[%s2043_s26 + $0x38] sm:$0xff]  ;;  %v1796_v30 = vpack.c.bf16 %v2085_v25, %v2083_v23 }
  0x1c   : > { %1787 = vmatpush3.bf16.msra.mxu1 %v1784_v9  ;;  %1774 = vmatpush3.bf16.msra.mxu0 %v1773_v21  ;;  %v397_v29 = vld [vmem:[%s2043_s26 + $0x30] sm:$0xff]  ;;  %v1779_v31 = vpack.c.bf16 %v460_v27, %v459_v26  ;;  %v462_v33 = vld [vmem:[%s2326_s3 + $0x38] sm:$0xff]  ;;  %v390_v34 = vld [vmem:[%s2037_s22] sm:$0xff] }
  0x1d   : > { %1789 = vmatprep.subr.bf16.mxu1 %v1788_v12  ;;  %1775 = vmatprep.subr.bf16.mxu0 %v1951_v11  ;;  %v461_v32 = vld [vmem:[%s2326_s3 + $0x30] sm:$0xff]  ;;  %v950_v57 = vld [vmem:[%s2330_s7] sm:$0xff]  ;;  %v951_v58 = vld [vmem:[%s2330_s7 + $0x8] sm:$0xff] }
  0x1e   : > { %v1782_v35 = vpack.c.bf16 %v462_v33, %v461_v32  ;;  %v952_v59 = vld [vmem:[%s2330_s7 + $0x10] sm:$0xff]  ;;  %v1824_v60 = vpack.c.bf16 %v951_v58, %v950_v57  ;;  %v953_v61 = vld [vmem:[%s2330_s7 + $0x18] sm:$0xff]  ;;  %v785_v32 = vld [vmem:[%s2328_s5 + $0x8] sm:$0xff] }
  0x1f   : > { %423 = vperm.xlu1 %1870, %v396_v19   ;;  %420 = vperm.xlu0 %1869, %v395_v20   ;;  %v1828_v62 = vpack.c.bf16 %v953_v61, %v952_v59  ;;  %v1515_v58 = vld [vmem:[%s2329_s6] ss:$0 sm:$0xff] }
  0x20   : > { %1791 = vmatpush3.bf16.msra.mxu1 %v1788_v12  ;;  %1777 = vmatpush3.bf16.msra.mxu0 %v1776_v24 }
  0x21   : > { %1793 = vmatprep.subr.bf16.mxu1 %v1792_v22  ;;  %1778 = vmatprep.subr.bf16.mxu0 %v1951_v11 }
  0x23   : > { %429 = vperm.xlu1 %1870, %v398_v28   ;;  %426 = vperm.xlu0 %1869, %v397_v29  }
  0x24   : > { %1795 = vmatpush3.bf16.msra.mxu1 %v1792_v22  ;;  %1780 = vmatpush3.bf16.msra.mxu0 %v1779_v31  ;;  %v784_v31 = vld [vmem:[%s2328_s5] sm:$0xff] }
  0x25   : > { %1797 = vmatprep.subr.bf16.mxu1 %v1796_v30  ;;  %1781 = vmatprep.subr.bf16.mxu0 %v1951_v11  ;;  %v1813_v33 = vpack.c.bf16 %v785_v32, %v784_v31 }
  0x27   : > { %402 = vperm.xlu0 %1869, %v390_v34   ;;  %v786_v34 = vld [vmem:[%s2328_s5 + $0x10] sm:$0xff] }
  0x28   : > { %1799 = vmatpush3.bf16.msra.mxu1 %v1796_v30  ;;  %1783 = vmatpush3.bf16.msra.mxu0 %v1782_v35  ;;  %v2183_v30 = vld [vmem:[%s2332_s9] sm:$0xff]  ;;  %v787_v35 = vld [vmem:[%s2328_s5 + $0x18] sm:$0xff] }
  0x29   : > { %1800 = vmatprep.subr.bf16.mxu0 %v1951_v11  ;;  %1825 = vmatprep.subr.bf16.mxu1 %v1824_v60 }
  0x96   : > { %v415_v39 = vpop.permute.xlu1 %414  ;;  %v409_v40 = vpop.permute.xlu0 %408 }
  0x97   : > { %vm431_vm3 = vcmp.eq.s32.totalorder %v400_v38, %v409_v40  ;;  %vm433_vm4 = vcmp.eq.s32.totalorder %v400_v38, %v415_v39 }
  0x98   : > { %v1495_v41 = vsel %vm431_vm3, 1.0, %v1953_v36  ;;  %v1497_v44 = vsel %vm433_vm4, 1.0, %v1953_v36 }
  0x99   : > { %1666 = vmatprep.mubr.msk.f32.mxu1 %vm463_vm2, %v1495_v41 }
  0x9a   : > { %v418_v42 = vpop.permute.xlu1 %417  ;;  %v412_v43 = vpop.permute.xlu0 %411 }
  0x9b   : > { %vm432_vm5 = vcmp.eq.s32.totalorder %v400_v38, %v412_v43  ;;  %vm434_vm6 = vcmp.eq.s32.totalorder %v400_v38, %v418_v42 }
  0x9c   : > { %v1496_v45 = vsel %vm432_vm5, 1.0, %v1953_v36  ;;  %v1498_v48 = vsel %vm434_vm6, 1.0, %v1953_v36 }
  0x9d   : > { %1667 = vmatmul.mubr.msk.f32.vlgmr.msra.gmra.mrb[0].mxu1 %vm463_vm2, %v1496_v45  ;;  %v780_v45 = vld [vmem:[%s2327_s4] sm:$0xff] }
  0x9e   : > { %v424_v46 = vpop.permute.xlu1 %423  ;;  %1669 = vmatprep.mubr.msk.f32.mxu1 %vm463_vm2, %v1497_v44  ;;  %v421_v47 = vpop.permute.xlu0 %420  ;;  %1827 = vmatpush3.bf16.msra.mxu1 %v1824_v60 }
  0x9f   : > { %vm435_vm7 = vcmp.eq.s32.totalorder %v400_v38, %v421_v47  ;;  %vm436_vm8 = vcmp.eq.s32.totalorder %v400_v38, %v424_v46  ;;  %1829 = vmatprep.subr.bf16.mxu1 %v1828_v62  ;;  %v781_v46 = vld [vmem:[%s2327_s4 + $0x8] sm:$0xff] }
  0xa0   : > { %v1499_v49 = vsel %vm435_vm7, 1.0, %v1953_v36  ;;  %v1500_v52 = vsel %vm436_vm8, 1.0, %v1953_v36 }
  0xa1   : > { %1670 = vmatmul.mubr.msk.f32.gmra.mrb[2].mxu1 %vm463_vm2, %v1498_v48 }
  0xa2   : > { %v430_v50 = vpop.permute.xlu1 %429  ;;  %1672 = vmatprep.mubr.msk.f32.mxu1 %vm463_vm2, %v1499_v49  ;;  %v427_v51 = vpop.permute.xlu0 %426  ;;  %1831 = vmatpush3.bf16.msra.mxu1 %v1828_v62  ;;  %v1819_v49 = vpack.c.bf16 %v781_v46, %v780_v45 }
  0xa3   : > { %vm437_vm9 = vcmp.eq.s32.totalorder %v400_v38, %v427_v51  ;;  %vm438_vm10 = vcmp.eq.s32.totalorder %v400_v38, %v430_v50  ;;  %v782_v50 = vld [vmem:[%s2327_s4 + $0x10] sm:$0xff]  ;;  %v783_v51 = vld [vmem:[%s2327_s4 + $0x18] sm:$0xff] }
  0xa4   : > { %v1501_v53 = vsel %vm437_vm9, 1.0, %v1953_v36  ;;  %v1502_v55 = vsel %vm438_vm10, 1.0, %v1953_v36 }
  0xa5   : > { %1673 = vmatmul.mubr.msk.f32.gmra.mrb[4].mxu1 %vm463_vm2, %v1500_v52 }
  0xa6   : > { %1675 = vmatprep.mubr.msk.f32.mxu1 %vm463_vm2, %v1501_v53  ;;  %v403_v54 = vpop.permute.xlu0 %402 }
  0xa7   : > { %vm404_vm11 = vcmp.eq.s32.totalorder %v400_v38, %v403_v54  ;;  %v1816_v38 = vpack.c.bf16 %v787_v35, %v786_v34  ;;  %v1822_v54 = vpack.c.bf16 %v783_v51, %v782_v50 }
  0xa8   : > { %v1494_v56 = vsel %vm404_vm11, 1.0, %v1953_v36 }
  0xa9   : > { %1648 = vmatmul.mubr.msk.f32.vlgmr.msra.gmra.mrb[0].mxu0 %vm463_vm2, %v1494_v56  ;;  %1676 = vmatmul.mubr.msk.f32.gmra.mrb[6].mxu1 %vm463_vm2, %v1502_v55 }
  0xaa   : > { %1694 = vmatprep.mubr.msk.f32.mxu0 %vm1952_vm1, %v1953_v36 }
 0x170   : > { %v2143_v63 = vpop.f32.mrb[0].mxu1 }
 0x171   : > { %v2145_v0 = vpop.f32.mrb[1].mxu1  ;;  %685 = vrot.lane.b32.xlu0 %v2143_v63, %s1954_s18 }
 0x172   : > { %683 = vrot.lane.b32.xlu1 %v2145_v0, %s1954_s18 }
 0x174   : > { %v2149_v1 = vpop.f32.mrb[2].mxu1 }
 0x175   : > { %v2151_v2 = vpop.f32.mrb[3].mxu1  ;;  %689 = vrot.lane.b32.xlu0 %v2149_v1, %s1954_s18 }
 0x176   : > { %687 = vrot.lane.b32.xlu1 %v2151_v2, %s1954_s18 }
 0x178   : > { %v2155_v3 = vpop.f32.mrb[4].mxu1 }
 0x179   : > { %v2157_v4 = vpop.f32.mrb[5].mxu1  ;;  %693 = vrot.lane.b32.xlu0 %v2155_v3, %s1954_s18 }
 0x17a   : > { %691 = vrot.lane.b32.xlu1 %v2157_v4, %s1954_s18 }
 0x17c   : > { %v2161_v5 = vpop.f32.mrb[0].mxu0  ;;  %v2163_v9 = vpop.f32.mrb[6].mxu1 }
 0x17d   : > { %v2165_v12 = vpop.f32.mrb[7].mxu1  ;;  %697 = vrot.lane.b32.xlu0 %v2163_v9, %s1954_s18  ;;  %v1649_v15 = vpop.f32.mrb[1].mxu0 }
 0x17e   : > { %695 = vrot.lane.b32.xlu1 %v2165_v12, %s1954_s18 }
 0x1e3   : > { %v686_v16 = vpop.permute.xlu0 %685 }
 0x1e4   : > { %v684_v17 = vpop.permute.xlu1 %683 }
 0x1e5   : > { %v1801_v18 = vpack.c.bf16 %v686_v16, %v684_v17  ;;  %1727 = vmatprep.mubr.msk.f32.mxu1 %vm788_vm12, %v684_v17 }
 0x1e6   : > { %1728 = vmatmul.mubr.msk.f32.vlgmr.msra.gmra.mrb[8].mxu1 %vm788_vm12, %v686_v16 }
 0x1e7   : > { %1802 = vmatpush3.bf16.msra.mxu0 %v1801_v18  ;;  %v690_v19 = vpop.permute.xlu0 %689 }
 0x1e8   : > { %v688_v20 = vpop.permute.xlu1 %687  ;;  %1803 = vmatprep.subr.bf16.mxu0 %v1951_v11 }
 0x1e9   : > { %v1804_v21 = vpack.c.bf16 %v690_v19, %v688_v20  ;;  %1730 = vmatprep.mubr.msk.f32.mxu1 %vm788_vm12, %v688_v20 }
 0x1ea   : > { %1731 = vmatmul.mubr.msk.f32.gmra.mrb[10].mxu1 %vm788_vm12, %v690_v19 }
 0x1eb   : > { %1805 = vmatpush3.bf16.msra.mxu0 %v1804_v21  ;;  %v694_v22 = vpop.permute.xlu0 %693 }
 0x1ec   : > { %v692_v24 = vpop.permute.xlu1 %691  ;;  %1806 = vmatprep.subr.bf16.mxu0 %v1951_v11 }
 0x1ed   : > { %v1807_v26 = vpack.c.bf16 %v694_v22, %v692_v24  ;;  %1733 = vmatprep.mubr.msk.f32.mxu1 %vm788_vm12, %v692_v24 }
 0x1ee   : > { %1734 = vmatmul.mubr.msk.f32.gmra.mrb[12].mxu1 %vm788_vm12, %v694_v22 }
 0x1ef   : > { %1808 = vmatpush3.bf16.msra.mxu0 %v1807_v26  ;;  %v698_v27 = vpop.permute.xlu0 %697 }
 0x1f0   : > { %v696_v28 = vpop.permute.xlu1 %695  ;;  %1809 = vmatprep.subr.bf16.mxu0 %v1951_v11 }
 0x1f1   : > { %v1810_v29 = vpack.c.bf16 %v698_v27, %v696_v28  ;;  %1736 = vmatprep.mubr.msk.f32.mxu1 %vm788_vm12, %v696_v28 }
 0x1f2   : > { %1737 = vmatmul.mubr.msk.f32.gmra.mrb[14].mxu1 %vm788_vm12, %v698_v27 }
 0x1f3   : > { %1811 = vmatpush3.bf16.msra.mxu0 %v1810_v29 }
 0x1f4   : > { %1812 = vmatprep.subr.bf16.mxu0 %v1951_v11 }
 0x1f6   : > { %1695 = vmatmul.mubr.msk.f32.vlgmr.msra.gmra.mrb[2].mxu0 %vm463_vm2, %v2183_v30 }
 0x1f7   : > { %1705 = vmatprep.mubr.msk.f32.mxu0 %vm1952_vm1, %v1953_v36  ;;  %1814 = vmatpush3.bf16.msra.mxu0 %v1813_v33 }
 0x1f8   : > { %1815 = vmatprep.subr.bf16.mxu0 %v1951_v11 }
 0x1fb   : > { %1817 = vmatpush3.bf16.msra.mxu0 %v1816_v38 }
 0x1fc   : > { %1818 = vmatprep.subr.bf16.mxu0 %v1951_v11 }
 0x2b9   : > { %v1729_v39 = vpop.f32.mrb[8].mxu1 }
 0x2ba   : > { %v1040_v40 = vpop.f32.mrb[9].mxu1 }
 0x2bd   : > { %v1732_v41 = vpop.f32.mrb[10].mxu1 }
 0x2be   : > { %v1050_v42 = vpop.f32.mrb[11].mxu1 }
 0x2c1   : > { %v1735_v43 = vpop.f32.mrb[12].mxu1 }
 0x2c2   : > { %v1060_v44 = vpop.f32.mrb[13].mxu1 }
 0x2c5   : > { %v1738_v47 = vpop.f32.mrb[14].mxu1 }
 0x2c6   : > { %v1070_v48 = vpop.f32.mrb[15].mxu1 }
 0x2c9   : > { %v776_v52 = vpop.f32.mrb[2].mxu0 }
 0x2ca   : > { %v1696_v53 = vpop.f32.mrb[3].mxu0  ;;  %1706 = vmatmul.mubr.msk.f32.vlgmr.msra.gmra.mrb[4].mxu0 %vm788_vm12, %v776_v52 }
 0x2cb   : > { %1820 = vmatpush3.bf16.msra.mxu0 %v1819_v49  ;;  %1716 = vmatprep.mubr.msk.f32.mxu0 %vm1952_vm1, %v1953_v36 }
 0x2cc   : > { %1821 = vmatprep.subr.bf16.mxu0 %v1951_v11 }
 0x2cf   : > { %1823 = vmatpush3.bf16.msra.mxu0 %v1822_v54 }
 0x2d0   : > { %1832 = vmatprep.subr.bf16.mxu0 %v1951_v11 }
 0x2d2   : > { %1717 = vmatmul.mubr.msk.f32.vlgmr.msra.gmra.mrb[6].mxu0 %vm788_vm12, %v2161_v5  ;;  %v1525_v5 = vld [vmem:[%s2331_s8] ss:$0 sm:$0xff] }
 0x2d3   : > { %1755 = vmatprep.mubr.msk.f32.mxu0 %vm1952_vm1, %v1953_v36 }
 0x39d   : > { %v858_v55 = vpop.f32.mrb[4].mxu0 }
 0x39e   : > { %v1707_v56 = vpop.f32.mrb[5].mxu0 }
 0x3a5   : > { %v931_v57 = vpop.f32.mrb[6].mxu0 }
 0x3a6   : > { %v932_v59 = vadd.f32 %v931_v57, %v858_v55  ;;  %v1718_v60 = vpop.f32.mrb[7].mxu0 }
 0x3a8   : > { %v2228_v61 = vadd.f32 %v1515_v58, %v932_v59 }
 0x3aa   : > { %1871 = vtanh.f32 %v2228_v61  ;;  %955 = vrot.lane.b32.xlu1 %v2228_v61, %s1955_s25 }
 0x3b4   : > { %v1872_v62 = vpop.eup %1871 }
 0x3b5   : > { %1221 = vrot.lane.b32.xlu0 %v1872_v62, %s1956_s27 }
 0x41c   : > { %v956_v15 = vpop.permute.xlu1 %955 }
 0x41d   : > { %v1041_v16 = vadd.f32 %v1040_v40, %v956_v15  ;;  %v1046_v17 = vadd.f32 %v1729_v39, %v956_v15  ;;  %v1051_v18 = vadd.f32 %v1050_v42, %v956_v15  ;;  %v1056_v19 = vadd.f32 %v1732_v41, %v956_v15 }
 0x41e   : > { %v1061_v20 = vadd.f32 %v1060_v44, %v956_v15  ;;  %v1066_v21 = vadd.f32 %v1735_v43, %v956_v15  ;;  %v1071_v22 = vadd.f32 %v1070_v48, %v956_v15  ;;  %v1076_v24 = vadd.f32 %v1738_v47, %v956_v15 }
 0x41f   : > { %v1086_v26 = vadd.f32 %v1525_v5, %v1041_v16  ;;  %v1087_v27 = vadd.f32 %v1525_v5, %v1046_v17  ;;  %v1088_v28 = vadd.f32 %v1525_v5, %v1051_v18  ;;  %v1089_v29 = vadd.f32 %v1525_v5, %v1056_v19 }
 0x420   : > { %v1090_v31 = vadd.f32 %v1525_v5, %v1061_v20  ;;  %v1091_v32 = vadd.f32 %v1525_v5, %v1066_v21  ;;  %v1092_v33 = vadd.f32 %v1525_v5, %v1071_v22  ;;  %v1093_v45 = vadd.f32 %v1525_v5, %v1076_v24 }
 0x421   : > { %v1526_v34 = vmul.f32 -1.442695, %v1086_v26  ;;  %v1527_v35 = vmul.f32 -1.442695, %v1087_v27  ;;  %v1528_v38 = vmul.f32 -1.442695, %v1088_v28 }
 0x422   : > { %v1529_v46 = vmul.f32 -1.442695, %v1089_v29  ;;  %v1530_v39 = vmul.f32 -1.442695, %v1090_v31  ;;  %v1531_v40 = vmul.f32 -1.442695, %v1091_v32 }
 0x423   : > { %1873 = vpow2.f32 %v1526_v34  ;;  %v1532_v41 = vmul.f32 -1.442695, %v1092_v33  ;;  %v1533_v42 = vmul.f32 -1.442695, %v1093_v45 }
 0x424   : > { %1875 = vpow2.f32 %v1527_v35 }
 0x425   : > { %1877 = vpow2.f32 %v1528_v38 }
 0x426   : > { %1879 = vpow2.f32 %v1529_v46 }
 0x427   : > { %1881 = vpow2.f32 %v1530_v39 }
 0x428   : > { %1883 = vpow2.f32 %v1531_v40 }
 0x429   : > { %1885 = vpow2.f32 %v1532_v41 }
 0x42a   : > { %1887 = vpow2.f32 %v1533_v42 }
 0x42d   : > { %v1874_v43 = vpop.eup %1873 }
 0x42e   : > { %v1876_v44 = vpop.eup %1875  ;;  %v1118_v47 = vadd.f32 1.0, %v1874_v43 }
 0x42f   : > { %v1878_v48 = vpop.eup %1877  ;;  %v1119_v49 = vadd.f32 1.0, %v1876_v44 }
 0x430   : > { %v1880_v50 = vpop.eup %1879  ;;  %1889 = vrcp.f32 %v1118_v47  ;;  %v1120_v51 = vadd.f32 1.0, %v1878_v48 }
 0x431   : > { %v1882_v52 = vpop.eup %1881  ;;  %1891 = vrcp.f32 %v1119_v49  ;;  %v1121_v53 = vadd.f32 1.0, %v1880_v50 }
 0x432   : > { %v1884_v54 = vpop.eup %1883  ;;  %1893 = vrcp.f32 %v1120_v51  ;;  %v1122_v55 = vadd.f32 1.0, %v1882_v52 }
 0x433   : > { %v1886_v56 = vpop.eup %1885  ;;  %1895 = vrcp.f32 %v1121_v53  ;;  %v1123_v57 = vadd.f32 1.0, %v1884_v54 }
 0x434   : > { %v1888_v58 = vpop.eup %1887  ;;  %1897 = vrcp.f32 %v1122_v55  ;;  %v1124_v59 = vadd.f32 1.0, %v1886_v56 }
 0x435   : > { %1899 = vrcp.f32 %v1123_v57  ;;  %v1125_v60 = vadd.f32 1.0, %v1888_v58 }
 0x436   : > { %1901 = vrcp.f32 %v1124_v59 }
 0x437   : > { %1903 = vrcp.f32 %v1125_v60 }
 0x43a   : > { %v1890_v62 = vpop.eup %1889 }
 0x43b   : > { %v1892_v5 = vpop.eup %1891  ;;  %v1142_v15 = vmul.f32 %v1890_v62, %v2145_v0 }
 0x43c   : > { %v1894_v16 = vpop.eup %1893  ;;  %v1143_v17 = vmul.f32 %v1892_v5, %v2143_v63 }
 0x43d   : > { %v1896_v18 = vpop.eup %1895  ;;  %v1144_v19 = vmul.f32 %v1894_v16, %v2151_v2 }
 0x43e   : > { %v1898_v20 = vpop.eup %1897  ;;  %v1833_v21 = vpack.c.bf16 %v1143_v17, %v1142_v15  ;;  %v1145_v22 = vmul.f32 %v1896_v18, %v2149_v1  ;;  %v1516_v1 = vmul.f32 -1.442695, %v2228_v61 }
 0x43f   : > { %v1900_v24 = vpop.eup %1899  ;;  %v1146_v26 = vmul.f32 %v1898_v20, %v2157_v4 }
 0x440   : > { %v1902_v27 = vpop.eup %1901  ;;  %1834 = vmatpush3.bf16.msra.mxu0 %v1833_v21  ;;  %v1836_v28 = vpack.c.bf16 %v1145_v22, %v1144_v19  ;;  %v1147_v29 = vmul.f32 %v1900_v24, %v2155_v3  ;;  %1905 = vpow2.f32 %v1516_v1 }
 0x441   : > { %v1904_v31 = vpop.eup %1903  ;;  %1835 = vmatprep.subr.bf16.mxu0 %v1951_v11  ;;  %v1148_v63 = vmul.f32 %v1902_v27, %v2165_v12  ;;  %v1222_v12 = vpop.permute.xlu0 %1221 }
 0x442   : > { %v1839_v0 = vpack.c.bf16 %v1147_v29, %v1146_v26  ;;  %v1149_v2 = vmul.f32 %v1904_v31, %v2163_v9 }
 0x444   : > { %1837 = vmatpush3.bf16.msra.mxu0 %v1836_v28  ;;  %v1842_v32 = vpack.c.bf16 %v1149_v2, %v1148_v63 }
 0x445   : > { %1838 = vmatprep.subr.bf16.mxu0 %v1951_v11 }
 0x448   : > { %1840 = vmatpush3.bf16.msra.mxu0 %v1839_v0 }
 0x449   : > { %1841 = vmatprep.subr.bf16.mxu0 %v1951_v11  ;;  %v1535_v11 = vld [vmem:[%s371_s19] ss:$0 sm:$0xff]  ;;  %s1423_s19 = sshll.u32 %s1957_s15, 4  ;;  %s1424_s19 = int_to_ptr.vmem [resolvable:$true] %s1423_s19 }
 0x44a   : > { %v1906_v3 = vpop.eup %1905  ;;  %s1911_s30 = scalar_lea.vmem %s1424_s19, 1024  ;;  %p1918_p9 = scmp.lt.s32.totalorder %s1424_s19, %s1424_s19 }
 0x44b   : > { %v946_v4 = vadd.f32 1.0, %v1906_v3  ;;  %p1912_p6 = scmp.ne.s32.totalorder %s1424_s19, %s1911_s30  ;;  %p1919_p10 = scmp.lt.s32.totalorder %s1911_s30, %s1911_s30 }
 0x44c   : > { %1843 = vmatpush3.bf16.msra.mxu0 %v1842_v32 }
 0x44d   : > { %1907 = vrcp.f32 %v946_v4  ;;  %p1913_p7 = pnand %p1912_p6, %p1848_p5  ;;  %p1920_p11 = por %p1919_p10, %p1918_p9 }
 0x44f   : > { %1756 = vmatmul.mubr.msk.f32.vlgmr.msra.gmra.mrb[8].mxu0 %vm463_vm2, %v2183_v30  ;;  %v1235_v30 = vshrl.u32 %v399_v37, 7  ;;  %p1914_p8 = pneg %p1913_p7 }
 0x451   : > { %vm1247_vm14 = vcmp.eq.s32.totalorder %v1235_v30, %v1535_v11  ;;  %v1236_v61 = vadd.s32 8, %v1235_v30  ;;  %v1237_v45 = vadd.s32 16, %v1235_v30  ;;  %v1238_v46 = vadd.s32 24, %v1235_v30  ;;  %p1921_p12 = pnand %p1920_p11, %p1914_p8 }
 0x452   : > { %v1536_v39 = vsel %vm1247_vm14, 1.0, %v1953_v36  ;;  %v1239_v40 = vadd.s32 32, %v1235_v30  ;;  %v1240_v41 = vadd.s32 40, %v1235_v30  ;;  %v1241_v37 = vadd.s32 48, %v1235_v30 }
 0x453   : > { %1760 = vmatprep.mubr.msk.f32.mxu1 %vm1271_vm13, %v1536_v39  ;;  %vm1248_vm15 = vcmp.eq.s32.totalorder %v1236_v61, %v1535_v11  ;;  %vm1249_vm0 = vcmp.eq.s32.totalorder %v1237_v45, %v1535_v11  ;;  %vm1250_vm1 = vcmp.eq.s32.totalorder %v1238_v46, %v1535_v11  ;;  %v1242_v43 = vadd.s32 56, %v1235_v30 }
 0x454   : > { %vm1251_vm3 = vcmp.eq.s32.totalorder %v1239_v40, %v1535_v11  ;;  %vm1252_vm4 = vcmp.eq.s32.totalorder %v1240_v41, %v1535_v11  ;;  %vm1253_vm5 = vcmp.eq.s32.totalorder %v1241_v37, %v1535_v11  ;;  %v1537_v49 = vsel %vm1248_vm15, 1.0, %v1953_v36 }
 0x455   : > { %vm1254_vm6 = vcmp.eq.s32.totalorder %v1242_v43, %v1535_v11  ;;  %v1538_v50 = vsel %vm1249_vm0, 1.0, %v1953_v36  ;;  %v1539_v51 = vsel %vm1250_vm1, 1.0, %v1953_v36  ;;  %v1540_v52 = vsel %vm1251_vm3, 1.0, %v1953_v36 }
 0x456   : > { %v1541_v53 = vsel %vm1252_vm4, 1.0, %v1953_v36  ;;  %v1542_v54 = vsel %vm1253_vm5, 1.0, %v1953_v36  ;;  %v1543_v55 = vsel %vm1254_vm6, 1.0, %v1953_v36 }
 0x457   : > { %v1908_v9 = vpop.eup %1907 }
 0x458   : > { %v1224_v33 = vmul.f32 %v1908_v9, %v1222_v12 }
 0x522   : > { %v1216_v34 = vpop.f32.mrb[8].mxu0 }
 0x523   : > { %v1225_v35 = vadd.f32 %v1224_v33, %v1216_v34  ;;  %v1757_v38 = vpop.f32.mrb[9].mxu0 }
 0x525   : > { %1909 = vtanh.f32 %v1225_v35 }
 0x52f   : > { %v1910_v42 = vpop.eup %1909 }
 0x530   : > { %1228 = vrot.lane.b32.xlu1 %v1910_v42, %s1955_s25 }
 0x5a2   : > { %v1229_v44 = vpop.permute.xlu1 %1228 }
 0x5a3   : > { %v1231_v47 = vmul.f32 %v1908_v9, %v1229_v44 }
 0x5a5   : > { %v1232_v48 = vsel %vm788_vm12, %v1225_v35, %v1231_v47 }
 0x5a6   : > { %1758 = vmatprep.subr.mxu1 %v1232_v48 }
 0x5a7   : > { %1759 = vmatpush3.msra.mxu1 %v1232_v48 }
 0x5a8   : > { %1761 = vmatmul.mubr.msk.f32.vlgmr.msra.gmra.mrb[16].mxu1 %vm1271_vm13, %v1537_v49 }
 0x5a9   : > { %1763 = vmatprep.mubr.msk.f32.mxu1 %vm1271_vm13, %v1538_v50 }
 0x5ac   : > { %1764 = vmatmul.mubr.msk.f32.gmra.mrb[18].mxu1 %vm1271_vm13, %v1539_v51 }
 0x5ad   : > { %1766 = vmatprep.mubr.msk.f32.mxu1 %vm1271_vm13, %v1540_v52 }
 0x5b0   : > { %1767 = vmatmul.mubr.msk.f32.gmra.mrb[20].mxu1 %vm1271_vm13, %v1541_v53 }
 0x5b1   : > { %1769 = vmatprep.mubr.msk.f32.mxu1 %vm1271_vm13, %v1542_v54 }
 0x5b4   : > { %1770 = vmatmul.mubr.msk.f32.gmra.mrb[22].mxu1 %vm1271_vm13, %v1543_v55 }
 0x67b   : > { %v1762_v56 = vpop.f32.mrb[16].mxu1 }
 0x67c   : > { %v1402_v57 = vadd.f32 %v1762_v56, %v2052_v7  ;;  %v1362_v58 = vpop.f32.mrb[17].mxu1 }
 0x67d   : > { %v1401_v59 = vadd.f32 %v1362_v58, %v2050_v6 }
 0x67e   : > { %1410 = vst.msk [vmem:[#allocation2 + $0x8] sm:$0xff] %vm463_vm2, %v1402_v57 }
 0x67f   : > { %1409 = vst.msk [vmem:[#allocation2] sm:$0xff] %vm463_vm2, %v1401_v59  ;;  %v1765_v60 = vpop.f32.mrb[18].mxu1 }
 0x680   : > { %v1404_v62 = vadd.f32 %v1765_v60, %v2058_v10  ;;  %v1372_v5 = vpop.f32.mrb[19].mxu1 }
 0x681   : > { %v1403_v15 = vadd.f32 %v1372_v5, %v2054_v8 }
 0x682   : > { %1412 = vst.msk [vmem:[#allocation2 + $0x18] sm:$0xff] %vm463_vm2, %v1404_v62 }
 0x683   : > { %1411 = vst.msk [vmem:[#allocation2 + $0x10] sm:$0xff] %vm463_vm2, %v1403_v15  ;;  %v1768_v36 = vpop.f32.mrb[20].mxu1 }
 0x684   : > { %v1406_v7 = vadd.f32 %v1768_v36, %v2065_v14  ;;  %v1382_v16 = vpop.f32.mrb[21].mxu1 }
 0x685   : > { %v1405_v6 = vadd.f32 %v1382_v16, %v2063_v13 }
 0x686   : > { %1414 = vst.msk [vmem:[#allocation2 + $0x28] sm:$0xff] %vm463_vm2, %v1406_v7 }
 0x687   : > { %1413 = vst.msk [vmem:[#allocation2 + $0x20] sm:$0xff] %vm463_vm2, %v1405_v6  ;;  %v1771_v10 = vpop.f32.mrb[22].mxu1 }
 0x688   : > { %v1408_v8 = vadd.f32 %v1771_v10, %v2085_v25  ;;  %v1392_v17 = vpop.f32.mrb[23].mxu1 }
 0x689   : > { %v1407_v18 = vadd.f32 %v1392_v17, %v2083_v23 }
 0x68a   : > { %1416 = vst.msk [vmem:[#allocation2 + $0x38] sm:$0xff] %vm463_vm2, %v1408_v8 }
 0x68b   : > { %1415 = vst.msk [vmem:[#allocation2 + $0x30] sm:$0xff] %vm463_vm2, %v1407_v18 }
 0x68c   : > { %1924 = shalt.err (!%p1921_p12)
}
 0x68d   : > { %s1925_s16 = scalar_lea.hbm %s2333_s10, 1024 }
 0x68e   : > { %p1926_p13 = scmp.ne.s32.totalorder %s2333_s10, %s1925_s16  ;;  %p1931_p2 = scmp.lt.u32.totalorder %s1925_s16, %s2333_s10 }
 0x690   : > { %p1927_p0 = pnand %p1926_p13, %p1848_p5 }
 0x692   : > { %p1928_p1 = pneg %p1927_p0 }
 0x694   : > { %p1933_p3 = pnand %p1931_p2, %p1928_p1 }
 0x696   : > { %1936 = shalt.err (!%p1933_p3)
}
 0x697   : > { %s1958_s23 = smov 128   ;;  %s1959_s24 = smov 8  }
 0x698   : > { %1845 = dma.vmem_to_hbm [thread:$0]  (%p1848_p5), %s1424_s19, 1024, %s2333_s10, [#allocation3], %s1958_s23, %s1958_s23, %s1959_s24  }
 0x699   : > { %1942 = dma.done.wait (%p1848_p5), [#allocation3], 1024  }
 0x69a   : > { %1944 = vsyncadd (%p1848_p5), [#allocation3], 4294966272 }
 0x69b PF: > { %s21_s13 = sadd.s32 1, %s1947_s13  }
 0x69c   : > { %p18_p4 = scmp.ge.s32.totalorder %s21_s13, 6  }
 0x69e   :  { %20 = sbr.rel (!%p18_p4) target bundleno = 1 (0x1), region = 97 }
 0x6a5   :  { %1439 = vsyncpa [#allocation3], 1 }
 0x6a6   :  { %1441 = vsyncpa [#allocation3 + $0x1], 1 }

</bundles_post_ra>
